<compile_context>
chip_gen: v7x
topology: tpu7x:2x2x1
jax: 0.10.0
libtpu: 0.0.40
codegen_flags: <defaults>
</compile_context>

<pallas_src>
import jax
import jax.numpy as jnp
from jax import lax
from jax.experimental import pallas as pl
from jax.experimental.pallas import tpu as pltpu

IN_FEATURES = 20
HIDDEN = 256
OUT_FEATURES = 10
OUT_PAD = 16              # output rows padded to a sublane multiple (>= 8)
SMALL_B_MAX = 512         # single-block (no grid) path at or below this batch
MAX_TILE_B = 2048         # upper bound on the batch tile of the tiled path

# Contract the last dim of both operands (w2^T @ h^T), i.e. trans_b matmul.
_TRANS_B_DIMS = (((1,), (1,)), ((), ()))


def _round_up(n, m):
    return ((n + m - 1) // m) * m


def _mlp_kernel(x_ref, w1_ref, b1_ref, w2t_ref, b2t_ref, o_ref):
    # Cast x to bf16 in-kernel (VALU has huge slack; the kernel is DMA-bound).
    x = x_ref[...].astype(jnp.bfloat16)
    # Hidden layer: bf16 x bf16 -> f32 accumulation on the MXU.
    h = jnp.dot(x, w1_ref[...], preferred_element_type=jnp.float32)
    # Bias + ReLU epilogue in f32 on the VPU (v5e has no bf16 VALU path).
    h = jnp.maximum(h + b1_ref[...], 0.0)
    # Output layer, computed transposed: (OUT_PAD, HIDDEN) x (TILE_B, HIDDEN)^T
    # -> (OUT_PAD, TILE_B).  Batch lands on the lane axis, so the f32 writeback
    # is lane-dense and 8x smaller than a 128-lane padded output block.
    out_t = lax.dot_general(
        w2t_ref[...], h.astype(jnp.bfloat16),
        dimension_numbers=_TRANS_B_DIMS,
        preferred_element_type=jnp.float32)
    o_ref[...] = (out_t + b2t_ref[...]).astype(o_ref.dtype)


@jax.jit
def mlp_forward(x, w1, b1, w2, b2):
    """x: (B, 20) f32; w1: (20, 256); b1: (1, 256); w2: (256, 10); b2: (1, 10)."""
    B = x.shape[0]

    # Tiny one-time operand prep (fused under jit): bf16 weights for the MXU,
    # transposed + sublane-padded second-layer weight and bias.
    b1_f = b1.reshape(1, HIDDEN).astype(jnp.float32)
    w1_b = w1.astype(jnp.bfloat16)
    w2t_b = (jnp.zeros((OUT_PAD, HIDDEN), jnp.float32)
             .at[:OUT_FEATURES, :].set(w2.T)).astype(jnp.bfloat16)
    b2t_f = (jnp.zeros((OUT_PAD, 1), jnp.float32)
             .at[:OUT_FEATURES, 0].set(b2.reshape(OUT_FEATURES)))

    if B <= SMALL_B_MAX:
        # Small batch: single block, no grid, every operand resident in VMEM.
        vmem = pltpu.MemorySpace.VMEM
        out_t = pl.pallas_call(
            _mlp_kernel,
            out_shape=jax.ShapeDtypeStruct((OUT_PAD, B), jnp.float32),
            in_specs=[pl.BlockSpec(memory_space=vmem)] * 5,
            out_specs=pl.BlockSpec(memory_space=vmem),
        )(x, w1_b, b1_f, w2t_b, b2t_f)
    else:
        # Tiled path: large batch tile amortizes per-grid-step overhead, capped
        # so the grid has >= 2 steps (keeps both v7x TensorCores busy).
        # Weights/biases stay VMEM-resident across steps via constant
        # index_maps; only the x tile and the small transposed output move.
        tile_b = min(MAX_TILE_B, _round_up(pl.cdiv(B, 2), 128))
        grid = pl.cdiv(B, tile_b)
        out_t = pl.pallas_call(
            _mlp_kernel,
            out_shape=jax.ShapeDtypeStruct((OUT_PAD, B), jnp.float32),
            grid=(grid,),
            in_specs=[
                pl.BlockSpec((tile_b, IN_FEATURES), lambda i: (i, 0)),
                pl.BlockSpec((IN_FEATURES, HIDDEN), lambda i: (0, 0)),
                pl.BlockSpec((1, HIDDEN), lambda i: (0, 0)),
                pl.BlockSpec((OUT_PAD, HIDDEN), lambda i: (0, 0)),
                pl.BlockSpec((OUT_PAD, 1), lambda i: (0, 0)),
            ],
            out_specs=pl.BlockSpec((OUT_PAD, tile_b), lambda i: (0, i)),
            compiler_params=pltpu.CompilerParams(
                dimension_semantics=("parallel",)),
        )(x, w1_b, b1_f, w2t_b, b2t_f)

    # Cheap wrapper-side slice + transpose back to (B, 10).
    return out_t[:OUT_FEATURES, :].T


def mlp_reference(x, w1, b1, w2, b2, emulate_bf16=False):
    """Pure-JAX reference (f32 math; optionally emulating bf16 operand rounding)."""
    f32 = jnp.float32
    hi = lax.Precision.HIGHEST
    if emulate_bf16:
        x = x.astype(jnp.bfloat16).astype(f32)
        w1 = w1.astype(jnp.bfloat16).astype(f32)
        w2 = w2.astype(jnp.bfloat16).astype(f32)
    h = jnp.maximum(jnp.dot(x, w1, precision=hi) + b1.reshape(1, -1), 0.0)
    if emulate_bf16:
        h = h.astype(jnp.bfloat16).astype(f32)
    return jnp.dot(h, w2, precision=hi) + b2.reshape(1, -1)


def init_params(key):
    # Deterministic init mirroring nn.Linear default (uniform +/- 1/sqrt(fan_in)).
    k1, k2, k3, k4 = jax.random.split(key, 4)
    bound1 = 1.0 / jnp.sqrt(IN_FEATURES)
    bound2 = 1.0 / jnp.sqrt(HIDDEN)
    w1 = jax.random.uniform(k1, (IN_FEATURES, HIDDEN), jnp.float32, -bound1, bound1)
    b1 = jax.random.uniform(k2, (1, HIDDEN), jnp.float32, -bound1, bound1)
    w2 = jax.random.uniform(k3, (HIDDEN, OUT_FEATURES), jnp.float32, -bound2, bound2)
    b2 = jax.random.uniform(k4, (1, OUT_FEATURES), jnp.float32, -bound2, bound2)
    return w1, b1, w2, b2


if __name__ == "__main__":
    key = jax.random.PRNGKey(0)
    kx, kp, kbig = jax.random.split(key, 3)

    # Matches the reference spec: X = torch.rand(2, 20)
    x = jax.random.uniform(kx, (2, IN_FEATURES), jnp.float32)
    w1, b1, w2, b2 = init_params(kp)

    y = jax.block_until_ready(mlp_forward(x, w1, b1, w2, b2))
    assert y.shape == (2, OUT_FEATURES)

    # Tight check vs. a reference using the same bf16-rounded operands.
    y_tight = mlp_reference(x, w1, b1, w2, b2, emulate_bf16=True)
    assert jnp.allclose(y, y_tight, atol=2e-3, rtol=2e-3), \
        float(jnp.max(jnp.abs(y - y_tight)))
    # Loosened check vs. the pure-f32 reference (bf16 MXU operands, f32 accum).
    y_f32 = mlp_reference(x, w1, b1, w2, b2, emulate_bf16=False)
    assert jnp.allclose(y, y_f32, atol=5e-2, rtol=5e-2), \
        float(jnp.max(jnp.abs(y - y_f32)))

    # Exercise the batch-tiled path (>=2 grid steps, partial last block).
    x_big = jax.random.uniform(kbig, (1000, IN_FEATURES), jnp.float32)
    y_big = jax.block_until_ready(mlp_forward(x_big, w1, b1, w2, b2))
    assert y_big.shape == (1000, OUT_FEATURES)
    y_big_ref = mlp_reference(x_big, w1, b1, w2, b2, emulate_bf16=True)
    assert jnp.allclose(y_big, y_big_ref, atol=2e-3, rtol=2e-3), \
        float(jnp.max(jnp.abs(y_big - y_big_ref)))

    print("KERNEL_OK")
</pallas_src>

<mosaic_0001>
module attributes {stable_mosaic.version = 11 : i64} {
  func.func @_mlp_kernel(%arg0: memref<2x20xf32, #tpu.memory_space<vmem>>, %arg1: memref<20x256xbf16, #tpu.memory_space<vmem>>, %arg2: memref<1x256xf32, #tpu.memory_space<vmem>>, %arg3: memref<16x256xbf16, #tpu.memory_space<vmem>>, %arg4: memref<16x1xf32, #tpu.memory_space<vmem>>, %arg5: memref<16x2xf32, #tpu.memory_space<vmem>>) attributes {dimension_semantics = [], scalar_prefetch = 0 : i64, scratch_operands = 0 : i64, tpu.core_type = #tpu.core_type<tc>} {
    %c0 = arith.constant 0 : index
    %c0_0 = arith.constant 0 : index
    %0 = vector.load %arg0[%c0, %c0_0] : memref<2x20xf32, #tpu.memory_space<vmem>>, vector<2x20xf32>
    %1 = arith.truncf %0 : vector<2x20xf32> to vector<2x20xbf16>
    %c0_1 = arith.constant 0 : index
    %c0_2 = arith.constant 0 : index
    %2 = vector.load %arg1[%c0_1, %c0_2] : memref<20x256xbf16, #tpu.memory_space<vmem>>, vector<20x256xbf16>
    %cst = arith.constant dense<0.000000e+00> : vector<2x256xf32>
    %3 = tpu.matmul %1, %2, %cst {dimension_numbers = #tpu.dot_dimension_numbers<[1], [0], [0], [1], [0, 0, 1, 1], [], []>} : vector<2x20xbf16>, vector<20x256xbf16>, vector<2x256xf32> -> vector<2x256xf32>
    %c0_3 = arith.constant 0 : index
    %c0_4 = arith.constant 0 : index
    %4 = vector.load %arg2[%c0_3, %c0_4] : memref<1x256xf32, #tpu.memory_space<vmem>>, vector<1x256xf32>
    %5 = vector.broadcast %4 : vector<1x256xf32> to vector<2x256xf32>
    %6 = arith.addf %3, %5 : vector<2x256xf32>
    %cst_5 = arith.constant 0.000000e+00 : f32
    %7 = vector.broadcast %cst_5 : f32 to vector<2x256xf32>
    %8 = arith.maximumf %6, %7 : vector<2x256xf32>
    %c0_6 = arith.constant 0 : index
    %c0_7 = arith.constant 0 : index
    %9 = vector.load %arg3[%c0_6, %c0_7] : memref<16x256xbf16, #tpu.memory_space<vmem>>, vector<16x256xbf16>
    %10 = arith.truncf %8 : vector<2x256xf32> to vector<2x256xbf16>
    %cst_8 = arith.constant dense<0.000000e+00> : vector<16x2xf32>
    %11 = tpu.matmul %9, %10, %cst_8 {dimension_numbers = #tpu.dot_dimension_numbers<[1], [1], [0], [0], [0, 0, 1, 0], [], []>} : vector<16x256xbf16>, vector<2x256xbf16>, vector<16x2xf32> -> vector<16x2xf32>
    %c0_9 = arith.constant 0 : index
    %c0_10 = arith.constant 0 : index
    %12 = vector.load %arg4[%c0_9, %c0_10] : memref<16x1xf32, #tpu.memory_space<vmem>>, vector<16x1xf32>
    %13 = vector.broadcast %12 : vector<16x1xf32> to vector<16x2xf32>
    %14 = arith.addf %11, %13 : vector<16x2xf32>
    %c0_11 = arith.constant 0 : index
    %c0_12 = arith.constant 0 : index
    %15 = vector.load %arg5[%c0_11, %c0_12] : memref<16x2xf32, #tpu.memory_space<vmem>>, vector<16x2xf32>
    tpu.vector_store %arg5[%c0_11, %c0_12], %14 {strides = array<i32>} : memref<16x2xf32, #tpu.memory_space<vmem>>, vector<16x2xf32>,
    return
  }
}

</mosaic_0001>

<bundles_post_ra>
// kernel: mlp_forward.1
= control target key start
LH: loop header
LB: loop body
LE: loop exit
PB: predicated region body
PF: predicated region fallthrough
CT: control target
= control target key end

     0   :  { %v199_v1 = vmov 0   ;;  %vm57_vm0 = vcmask 1041408   ;;  %vm53_vm1 = vcmask 162816   ;;  %v28_v12 = vlaneseq  ;;  %s263_s1 = inlined_call_operand.vmem [shape: bf16[20,256], index: 1, kind: input, shape index: {}]   ;;  %s264_s0 = inlined_call_operand.vmem [shape: f32[2,20], index: 0, kind: input, shape index: {}]   ;;  %s265_s3 = inlined_call_operand.vmem [shape: bf16[16,256], index: 3, kind: input, shape index: {}]   ;;  %s266_s4 = inlined_call_operand.vmem [shape: f32[16,1], index: 4, kind: input, shape index: {}]   ;;  %s267_s2 = inlined_call_operand.vmem [shape: f32[1,256], index: 2, kind: input, shape index: {}]   ;;  %s268_s5 = inlined_call_operand.vmem [shape: f32[16,2], index: 5, kind: output, shape index: {}]  }
   0x1   :  { %v25_v0 = vld [vmem:[%s263_s1 + $0x10] sm:$0x33]  ;;  %96 = vmatprep.mubr.bf16.mxu0 %v199_v1  ;;  %190 = vset.pattern.permute.xlu0 %v199_v1  ;;  %v191_v2 = vld [vmem:[%s263_s1 + $0x4] ss:$8 sps:$4 sm:$0xff]   ;;  %v194_v4 = vld [vmem:[%s263_s1] ss:$8 sps:$4 sm:$0xff]  }
   0x2   :  { %v184_v3 = vcombine.high %v25_v0, %v25_v0  ;;  %v183_v5 = vcombine.low %v25_v0, %v25_v0  ;;  %64 = vmatprep.subr.bf16.mxu0 %v191_v2  ;;  %v21_v6 = vld [vmem:[%s264_s0] sm:$0x3]  ;;  %v198_v9 = vld [vmem:[%s265_s3 + $0x4] ss:$8 sps:$4 sm:$0xff]   ;;  %v29_v13 = vshrl.u32 %v28_v12, 7  ;;  %vm174_vm2 = vcmask 15360  }
   0x3   :  { %65 = vmatpush1.bf16.msra.mxu0 %v194_v4  ;;  %v22_v8 = vpack.c.bf16 %v21_v6, %v21_v6  ;;  %165 = vmatprep.mubr.bf16.mxu1 %v198_v9  ;;  %v111_v10 = vld [vmem:[%s266_s4] sm:$0xff]  ;;  %v112_v11 = vld [vmem:[%s266_s4 + $0x8] sm:$0xff] }
   0x4   :  { %185 = vmatprep.subr.msk.bf16.mxu0 %vm57_vm0, %v184_v3  ;;  %v59_v7 = vsel %vm57_vm0, %v183_v5, 0  ;;  %115 = vperm.xlu0 %190, %v111_v10   ;;  %v30_v14 = vsub.s32 0, %v29_v13  ;;  %v26_v15 = vld [vmem:[%s267_s2] sm:$0x3]  ;;  %v34_v16 = vsub.s32 1, %v29_v13 }
   0x5   :  { %v196_v29 = vld [vmem:[%s265_s3] ss:$8 sps:$4 sm:$0xff]  }
   0x6   :  { %v31_v17 = vrot.slane %v26_v15, %v30_v14  ;;  %v35_v18 = vrot.slane %v26_v15, %v34_v16 }
   0x7   :  { %67 = vmatpush1.bf16.msra.mxu0 %v59_v7 }
   0x8   :  { %120 = vperm.xlu0 %190, %v112_v11  }
   0xa   :  { %186 = vmatmul.mubr.msk.bf16.vlgmr.msra.gmra.mrb[0].mxu0 %vm53_vm1, %v22_v8 }
  0x83   :  { %v116_v30 = vpop.permute.xlu0 %115 }
  0x87   :  { %v121_v34 = vpop.permute.xlu0 %120 }
  0xdd   :  { %v98_v19 = vpop.f32.mrb[0].mxu0 }
  0xde   :  { %v99_v20 = vadd.f32 %v98_v19, %v31_v17  ;;  %v100_v21 = vpop.f32.mrb[1].mxu0 }
  0xdf   :  { %v101_v22 = vadd.f32 %v100_v21, %v35_v18  ;;  %v102_v23 = vpop.f32.mrb[2].mxu0 }
  0xe0   :  { %v105_v24 = vmax.f32 %v99_v20, 0.0  ;;  %v103_v25 = vpop.f32.mrb[3].mxu0 }
  0xe1   :  { %v106_v26 = vmax.f32 %v101_v22, 0.0 }
  0xe2   :  { %v109_v28 = vpack.c.bf16 %v105_v24, %v105_v24 }
  0xe3   :  { %v110_v27 = vpack.c.bf16 %v106_v26, %v106_v26 }
  0xe5   :  { %133 = vmatprep.subr.bf16.mxu1 %v110_v27 }
  0xe6   :  { %134 = vmatpush1.bf16.xpose.msra.mxu1 %v109_v28 }
  0xed   :  { %166 = vmatmul.mubr.bf16.vlgmr.msra.gmra.mrb[0].mxu1 %v196_v29 }
 0x1c0   :  { %v167_v31 = vpop.f32.mrb[0].mxu1 }
 0x1c1   :  { %v168_v32 = vadd.f32 %v167_v31, %v116_v30  ;;  %v169_v33 = vpop.f32.mrb[1].mxu1 }
 0x1c2   :  { %v170_v35 = vpop.f32.mrb[2].mxu1 }
 0x1c3   :  { %175 = vst.msk [vmem:[%s268_s5] sm:$0xff] %vm174_vm2, %v168_v32  ;;  %v171_v36 = vadd.f32 %v170_v35, %v121_v34  ;;  %v172_v37 = vpop.f32.mrb[3].mxu1 }
 0x1c5   :  { %176 = vst.msk [vmem:[%s268_s5 + $0x8] sm:$0xff] %vm174_vm2, %v171_v36 }

</bundles_post_ra>
